<compile_context>
chip_gen: v7x
topology: tpu7x:2x2x1
jax: 0.10.0
libtpu: 0.0.40
codegen_flags: <defaults>
</compile_context>

<pallas_src>
import jax
import jax.numpy as jnp
from jax.experimental import pallas as pl
from jax.experimental.pallas import tpu as pltpu

HIDDEN = 512
OUT = 7
OUT_PAD = 128            # pad classifier output to a full 128-lane width
OUT_DTYPE = jnp.bfloat16  # lane-dense bf16 kernel output; wrapper casts to f32
TB_MAX = 1024            # hard cap on batch-tile rows per grid step
TK_MAX = 2048            # K (feature) tile when `size` is large
VMEM_BUDGET = 24 * 1024 * 1024  # planning budget (fits v7x 64 MiB w/ headroom)


def _cdiv(a, b):
    return -(-a // b)


def _round_up(a, m):
    return _cdiv(a, m) * m


def _elem_dtype():
    """bf16 elementwise (bias + Mish) on v6e/v7x; f32 on v5e and older/unknown."""
    try:
        kind = jax.devices()[0].device_kind.lower()
    except Exception:
        return jnp.float32
    if ("v6" in kind) or ("v7" in kind) or ("tpu7" in kind) or ("7x" in kind):
        return jnp.bfloat16
    return jnp.float32


def _k_plan(size):
    """K (feature-dim) tiling: (tile_k, padded_size, num_k_tiles)."""
    if size <= TK_MAX:
        return size, size, 1
    tk = TK_MAX
    size_pad = _round_up(size, tk)
    return tk, size_pad, size_pad // tk


def _mish(h):
    """Mish(x) = x * tanh(softplus(x)) via tanh(softplus(x)) = t/(t+2), t = e*(e+2).

    One exp + one approx reciprocal; the clamp at 20 is exact (factor == 1 in
    f32/bf16 beyond it).  `h` may be bf16 (v6e/v7x) or f32 (v5e); the approx
    reciprocal is kept in f32 (EUP vrcp), everything else stays in h's dtype.
    """
    e = jnp.exp(jnp.minimum(h, 20.0))
    t = e * (e + 2.0)
    inv = pl.reciprocal(t.astype(jnp.float32) + 2.0, approx=True)
    return h * t * inv.astype(h.dtype)


def _mlp_kernel_fused(x_ref, w1_ref, b1_ref, w2_ref, b2_ref, o_ref):
    """Whole feature dim in one block (size <= TK_MAX)."""
    # Linear(size, 512): bf16 MXU inputs, f32 accumulation.
    h32 = jnp.dot(x_ref[...], w1_ref[...], preferred_element_type=jnp.float32)
    # Dropout(p, inplace=True) is identity at inference (no RNG needed).
    # Bias + Mish in the elementwise dtype carried by b1 (bf16 on v6e/v7x).
    h = h32.astype(b1_ref.dtype) + b1_ref[...]
    h = _mish(h)
    # Linear(512, 7) padded to 128 output lanes (lane-dense unmasked store).
    o = jnp.dot(h.astype(jnp.bfloat16), w2_ref[...],
                preferred_element_type=jnp.float32)
    o_ref[...] = (o + b2_ref[...]).astype(o_ref.dtype)


def _mlp_kernel_ktiled(x_ref, w1_ref, b1_ref, w2_ref, b2_ref, o_ref, acc_ref):
    """K-tiled variant for large `size`: f32 VMEM accumulator over the K axis."""
    k = pl.program_id(1)

    @pl.when(k == 0)
    def _():
        acc_ref[...] = jnp.zeros_like(acc_ref)

    acc_ref[...] += jnp.dot(x_ref[...], w1_ref[...],
                            preferred_element_type=jnp.float32)

    @pl.when(k == pl.num_programs(1) - 1)
    def _():
        h = acc_ref[...].astype(b1_ref.dtype) + b1_ref[...]
        h = _mish(h)
        o = jnp.dot(h.astype(jnp.bfloat16), w2_ref[...],
                    preferred_element_type=jnp.float32)
        o_ref[...] = (o + b2_ref[...]).astype(o_ref.dtype)


def prepare_params(w1, b1, w2, b2):
    """One-time parameter prep (hoisted out of the per-call path).

    Weights are stored [in, out] so the kernel computes x @ W + b directly.
    """
    size = w1.shape[0]
    _, size_pad, _ = _k_plan(size)
    w1_b = w1.astype(jnp.bfloat16)                                   # [size, 512]
    if size_pad != size:
        w1_b = jnp.pad(w1_b, ((0, size_pad - size), (0, 0)))         # zero K pad
    b1_r = b1.reshape(1, HIDDEN).astype(_elem_dtype())               # [1, 512]
    w2_p = jnp.zeros((HIDDEN, OUT_PAD), jnp.bfloat16).at[:, :OUT].set(
        w2.astype(jnp.bfloat16))                                     # [512, 128]
    b2_p = jnp.zeros((1, OUT_PAD), jnp.float32).at[:, :OUT].set(
        b2.reshape(1, OUT).astype(jnp.float32))                      # [1, 128]
    return w1_b, b1_r, w2_p, b2_p


@jax.jit
def model_forward(x, w1_b, b1_r, w2_p, b2_p):
    """x: [B, size] f32. Returns [B, 7] f32."""
    # TODO(synk): `parent` is an opaque user-supplied module (frozen, no_grad);
    # treated as identity.  `featurizer` is an empty nn.Sequential -> identity.
    B, size = x.shape
    tk, size_pad, nk = _k_plan(size)

    # ---- batch tiling: balanced tiles inside a size-aware VMEM budget -------
    b_al = _round_up(max(B, 8), 8)
    # Per-row VMEM bytes: x (bf16, double-buffered), h/acc (f32) + bf16 copy,
    # out (double-buffered).  Weights counted once at 2x (conservative).
    row_bytes = 2 * tk * 2 + HIDDEN * (4 + 2) + 2 * OUT_PAD * jnp.dtype(OUT_DTYPE).itemsize
    w_bytes = 2 * (tk * HIDDEN * 2) + 2 * (HIDDEN * OUT_PAD * 2) + HIDDEN * 4 + OUT_PAD * 4
    tb_cap = max(8, ((VMEM_BUDGET - w_bytes) // row_bytes) // 8 * 8)
    tb_cap = min(tb_cap, TB_MAX)
    nb = _cdiv(b_al, tb_cap)
    if nb == 1 and b_al >= 512:
        nb = 2  # guarantee >= 2 batch tiles so v7x's two TensorCores both work
    TB = _round_up(_cdiv(b_al, nb), 8)
    B_pad = TB * nb
    vmem_est = w_bytes + TB * row_bytes
    vmem_limit = int(min(56 * 2**20, max(2 * vmem_est, 16 * 2**20)))

    # ---- pad + bf16 cast of x fused into one copy ---------------------------
    xb = x.astype(jnp.bfloat16)
    if (B_pad != B) or (size_pad != size):
        xb = jnp.pad(xb, ((0, B_pad - B), (0, size_pad - size)))

    # ---- build the pallas_call ----------------------------------------------
    if nk == 1:
        grid = (nb,)
        in_specs = [
            pl.BlockSpec((TB, size_pad), lambda i: (i, 0)),          # x tile
            pl.BlockSpec((size_pad, HIDDEN), lambda i: (0, 0)),      # w1 (resident)
            pl.BlockSpec((1, HIDDEN), lambda i: (0, 0)),             # b1 (resident)
            pl.BlockSpec((HIDDEN, OUT_PAD), lambda i: (0, 0)),       # w2 (resident)
            pl.BlockSpec((1, OUT_PAD), lambda i: (0, 0)),            # b2 (resident)
        ]
        out_specs = pl.BlockSpec((TB, OUT_PAD), lambda i: (i, 0))
        scratch = []
        kernel = _mlp_kernel_fused
        dims = ("parallel",)
    else:
        grid = (nb, nk)
        in_specs = [
            pl.BlockSpec((TB, tk), lambda i, k: (i, k)),             # x K-tile
            pl.BlockSpec((tk, HIDDEN), lambda i, k: (k, 0)),         # w1 K-tile
            pl.BlockSpec((1, HIDDEN), lambda i, k: (0, 0)),          # b1 (resident)
            pl.BlockSpec((HIDDEN, OUT_PAD), lambda i, k: (0, 0)),    # w2 (resident)
            pl.BlockSpec((1, OUT_PAD), lambda i, k: (0, 0)),         # b2 (resident)
        ]
        out_specs = pl.BlockSpec((TB, OUT_PAD), lambda i, k: (i, 0))
        scratch = [pltpu.VMEM((TB, HIDDEN), jnp.float32)]
        kernel = _mlp_kernel_ktiled
        dims = ("parallel", "arbitrary")

    out_padded = pl.pallas_call(
        kernel,
        out_shape=jax.ShapeDtypeStruct((B_pad, OUT_PAD), OUT_DTYPE),
        grid=grid,
        in_specs=in_specs,
        out_specs=out_specs,
        scratch_shapes=scratch,
        compiler_params=pltpu.CompilerParams(
            dimension_semantics=dims,
            vmem_limit_bytes=vmem_limit),
    )(xb, w1_b, b1_r, w2_p, b2_p)

    # The slice + f32 cast stays fused inside this jit; a consumer that can
    # take the padded bf16 slab should use `out_padded` directly instead.
    return out_padded[:B, :OUT].astype(jnp.float32)


if __name__ == "__main__":
    SIZE = 32     # `size` arg of Model.__init__
    B = 8         # batch
    P_DROP = 0.1  # Dropout prob (inference => identity; unused)

    key = jax.random.PRNGKey(0)
    kx, kw1, kb1, kw2, kb2 = jax.random.split(key, 5)

    x = jax.random.normal(kx, (B, SIZE), jnp.float32)
    # Deterministic parameter init (Linear weights stored as [in, out]).
    w1 = jax.random.normal(kw1, (SIZE, HIDDEN), jnp.float32) * (1.0 / SIZE ** 0.5)
    b1 = jax.random.normal(kb1, (HIDDEN,), jnp.float32) * 0.01
    w2 = jax.random.normal(kw2, (HIDDEN, OUT), jnp.float32) * (1.0 / HIDDEN ** 0.5)
    b2 = jax.random.normal(kb2, (OUT,), jnp.float32) * 0.01

    params = prepare_params(w1, b1, w2, b2)
    out = jax.block_until_ready(model_forward(x, *params))
    assert out.shape == (B, OUT) and out.dtype == jnp.float32

    # Reference in plain JAX with the same bf16 MXU-input rounding, f32
    # accumulation, and an exact (tanh/softplus) Mish.
    hb = jnp.dot(x.astype(jnp.bfloat16), w1.astype(jnp.bfloat16),
                 preferred_element_type=jnp.float32) + b1
    hb = hb * jnp.tanh(jnp.logaddexp(hb, 0.0))
    ref = jnp.dot(hb.astype(jnp.bfloat16), w2.astype(jnp.bfloat16),
                  preferred_element_type=jnp.float32) + b2

    max_err = float(jnp.max(jnp.abs(out - ref)))
    # bf16 elementwise Mish (on v6e/v7x), approx reciprocal and bf16 logits
    # stay well inside 2e-2 of the bf16-input reference.
    assert jnp.allclose(out, ref, atol=2e-2, rtol=2e-2), max_err

    print("KERNEL_OK")
</pallas_src>

<mosaic_0001>
module attributes {stable_mosaic.version = 11 : i64} {
  func.func @_mlp_kernel_fused(%arg0: i32, %arg1: memref<8x32xbf16, #tpu.memory_space<vmem>>, %arg2: memref<32x512xbf16, #tpu.memory_space<vmem>>, %arg3: memref<1x512xf32, #tpu.memory_space<vmem>>, %arg4: memref<512x128xbf16, #tpu.memory_space<vmem>>, %arg5: memref<1x128xf32, #tpu.memory_space<vmem>>, %arg6: memref<8x128xbf16, #tpu.memory_space<vmem>>) attributes {dimension_semantics = [#tpu.dimension_semantics<parallel>], iteration_bounds = array<i64: 1>, scalar_prefetch = 0 : i64, scratch_operands = 0 : i64, tpu.core_type = #tpu.core_type<tc>, window_params = [{transform_indices = @transform_0, window_bounds = array<i64: 8, 32>}, {pipeline_mode = #tpu.pipeline_mode<synchronous>, transform_indices = @transform_1, window_bounds = array<i64: 32, 512>}, {pipeline_mode = #tpu.pipeline_mode<synchronous>, transform_indices = @transform_2, window_bounds = array<i64: 1, 512>}, {pipeline_mode = #tpu.pipeline_mode<synchronous>, transform_indices = @transform_3, window_bounds = array<i64: 512, 128>}, {pipeline_mode = #tpu.pipeline_mode<synchronous>, transform_indices = @transform_4, window_bounds = array<i64: 1, 128>}, {transform_indices = @transform_5, window_bounds = array<i64: 8, 128>}]} {
    %c0 = arith.constant 0 : index
    %c0_0 = arith.constant 0 : index
    %0 = vector.load %arg1[%c0, %c0_0] : memref<8x32xbf16, #tpu.memory_space<vmem>>, vector<8x32xbf16>
    %c0_1 = arith.constant 0 : index
    %c0_2 = arith.constant 0 : index
    %1 = vector.load %arg2[%c0_1, %c0_2] : memref<32x512xbf16, #tpu.memory_space<vmem>>, vector<32x512xbf16>
    %cst = arith.constant dense<0.000000e+00> : vector<8x512xf32>
    %2 = tpu.matmul %0, %1, %cst {dimension_numbers = #tpu.dot_dimension_numbers<[1], [0], [0], [1], [0, 0, 1, 1], [], []>} : vector<8x32xbf16>, vector<32x512xbf16>, vector<8x512xf32> -> vector<8x512xf32>
    %c0_3 = arith.constant 0 : index
    %c0_4 = arith.constant 0 : index
    %3 = vector.load %arg3[%c0_3, %c0_4] : memref<1x512xf32, #tpu.memory_space<vmem>>, vector<1x512xf32>
    %4 = vector.broadcast %3 : vector<1x512xf32> to vector<8x512xf32>
    %5 = arith.addf %2, %4 : vector<8x512xf32>
    %cst_5 = arith.constant 2.000000e+01 : f32
    %6 = vector.broadcast %cst_5 : f32 to vector<8x512xf32>
    %7 = arith.minimumf %5, %6 : vector<8x512xf32>
    %8 = math.exp %7 : vector<8x512xf32>
    %cst_6 = arith.constant 2.000000e+00 : f32
    %9 = vector.broadcast %cst_6 : f32 to vector<8x512xf32>
    %10 = arith.addf %8, %9 : vector<8x512xf32>
    %11 = arith.mulf %8, %10 : vector<8x512xf32>
    %cst_7 = arith.constant 2.000000e+00 : f32
    %12 = vector.broadcast %cst_7 : f32 to vector<8x512xf32>
    %13 = arith.addf %11, %12 : vector<8x512xf32>
    %14 = tpu.reciprocal %13 {approx = true} : vector<8x512xf32> -> vector<8x512xf32>
    %15 = arith.mulf %5, %11 : vector<8x512xf32>
    %16 = arith.mulf %15, %14 : vector<8x512xf32>
    %17 = arith.truncf %16 : vector<8x512xf32> to vector<8x512xbf16>
    %c0_8 = arith.constant 0 : index
    %c0_9 = arith.constant 0 : index
    %18 = vector.load %arg4[%c0_8, %c0_9] : memref<512x128xbf16, #tpu.memory_space<vmem>>, vector<512x128xbf16>
    %cst_10 = arith.constant dense<0.000000e+00> : vector<8x128xf32>
    %19 = tpu.matmul %17, %18, %cst_10 {dimension_numbers = #tpu.dot_dimension_numbers<[1], [0], [0], [1], [0, 0, 1, 1], [], []>} : vector<8x512xbf16>, vector<512x128xbf16>, vector<8x128xf32> -> vector<8x128xf32>
    %c0_11 = arith.constant 0 : index
    %c0_12 = arith.constant 0 : index
    %20 = vector.load %arg5[%c0_11, %c0_12] : memref<1x128xf32, #tpu.memory_space<vmem>>, vector<1x128xf32>
    %21 = vector.broadcast %20 : vector<1x128xf32> to vector<8x128xf32>
    %22 = arith.addf %19, %21 : vector<8x128xf32>
    %23 = arith.truncf %22 : vector<8x128xf32> to vector<8x128xbf16>
    %c0_13 = arith.constant 0 : index
    %c0_14 = arith.constant 0 : index
    %24 = vector.load %arg6[%c0_13, %c0_14] : memref<8x128xbf16, #tpu.memory_space<vmem>>, vector<8x128xbf16>
    tpu.vector_store %arg6[%c0_13, %c0_14], %23 {strides = array<i32>} : memref<8x128xbf16, #tpu.memory_space<vmem>>, vector<8x128xbf16>,
    return
  }
  func.func @transform_0(%arg0: i32) -> (i32, i32) {
    %c0_i32 = arith.constant 0 : i32
    %c0_i32_0 = arith.constant 0 : i32
    return %arg0, %c0_i32 : i32, i32
  }
  func.func @transform_1(%arg0: i32) -> (i32, i32) {
    %c0_i32 = arith.constant 0 : i32
    %c0_i32_0 = arith.constant 0 : i32
    %c0_i32_1 = arith.constant 0 : i32
    return %c0_i32, %c0_i32_0 : i32, i32
  }
  func.func @transform_2(%arg0: i32) -> (i32, i32) {
    %c0_i32 = arith.constant 0 : i32
    %c0_i32_0 = arith.constant 0 : i32
    %c0_i32_1 = arith.constant 0 : i32
    return %c0_i32, %c0_i32_0 : i32, i32
  }
  func.func @transform_3(%arg0: i32) -> (i32, i32) {
    %c0_i32 = arith.constant 0 : i32
    %c0_i32_0 = arith.constant 0 : i32
    %c0_i32_1 = arith.constant 0 : i32
    return %c0_i32, %c0_i32_0 : i32, i32
  }
  func.func @transform_4(%arg0: i32) -> (i32, i32) {
    %c0_i32 = arith.constant 0 : i32
    %c0_i32_0 = arith.constant 0 : i32
    %c0_i32_1 = arith.constant 0 : i32
    return %c0_i32, %c0_i32_0 : i32, i32
  }
  func.func @transform_5(%arg0: i32) -> (i32, i32) {
    %c0_i32 = arith.constant 0 : i32
    %c0_i32_0 = arith.constant 0 : i32
    return %arg0, %c0_i32 : i32, i32
  }
}

</mosaic_0001>

<bundles_post_ra>
// kernel: model_forward.1
= control target key start
LH: loop header
LB: loop body
LE: loop exit
PB: predicated region body
PF: predicated region fallthrough
CT: control target
= control target key end

     0   :  { %10 = vsyncpa [#allocation3], 0  ;;  %s872_s0 = inlined_call_operand.vmem [shape: bf16[8,32], index: 0, kind: input, shape index: {}]   ;;  %s873_s1 = inlined_call_operand.hbm [shape: bf16[32,512], index: 1, kind: input, shape index: {}]   ;;  %s874_s2 = inlined_call_operand.vmem [shape: f32[1,512], index: 2, kind: input, shape index: {}]   ;;  %s875_s3 = inlined_call_operand.hbm [shape: bf16[512,128], index: 3, kind: input, shape index: {}]   ;;  %s876_s4 = inlined_call_operand.vmem [shape: f32[1,128], index: 4, kind: input, shape index: {}]   ;;  %s877_s5 = inlined_call_operand.vmem [shape: bf16[8,128], index: 5, kind: output, shape index: {}]  }
   0x1   :  { %11 = vsyncpa [#allocation5], 0  ;;  %s799_s18 = smov [#allocation2]   ;;  %s751_s22 = scalar_lea.hbm %s873_s1, 1024 }
   0x2   :  { %s19_s19 = sshll.u32 %s799_s18, 4  ;;  %p752_p0 = scmp.ne.s32.totalorder %s873_s1, %s751_s22  ;;  %s20_s19 = int_to_ptr.vmem [resolvable:$true] %s19_s19 }
   0x3   :  { %p755_p1 = scmp.lt.u32.totalorder %s751_s22, %s873_s1 }
   0x5   :  { %p757_p2 = pnand %p755_p1, %p752_p0 }
   0x7   :  { %760 = shalt.err (!%p757_p2)
}
   0x8   :  { %s761_s27 = scalar_lea.vmem %s20_s19, 1024  ;;  %p766_p4 = scmp.lt.s32.totalorder %s20_s19, %s20_s19 }
   0x9   :  { %p762_p3 = scmp.ne.s32.totalorder %s20_s19, %s761_s27  ;;  %p767_p5 = scmp.lt.s32.totalorder %s761_s27, %s761_s27 }
   0xb   :  { %p768_p6 = por %p767_p5, %p766_p4 }
   0xd   :  { %p769_p7 = pnand %p768_p6, %p762_p3 }
   0xf   :  { %772 = shalt.err (!%p769_p7)
}
  0x10   :  { %s800_s28 = smov 256   ;;  %s801_s29 = smov 16  }
  0x11   :  { %25 = dma.hbm_to_vmem [thread:$0]  %s873_s1, 1024, %s20_s19, [#allocation3], %s800_s28, %s800_s28, %s801_s29  }
  0x12   :  { %s802_s7 = smov [#allocation4]   ;;  %s773_s11 = scalar_lea.hbm %s875_s3, 4096 }
  0x13   :  { %s33_s8 = sshll.u32 %s802_s7, 4  ;;  %p774_p8 = scmp.ne.s32.totalorder %s875_s3, %s773_s11  ;;  %s34_s8 = int_to_ptr.vmem [resolvable:$true] %s33_s8 }
  0x14   :  { %p777_p9 = scmp.lt.u32.totalorder %s773_s11, %s875_s3 }
  0x16   :  { %p779_p10 = pnand %p777_p9, %p774_p8 }
  0x18   :  { %782 = shalt.err (!%p779_p10)
}
  0x19   :  { %s783_s16 = scalar_lea.vmem %s34_s8, 4096  ;;  %p788_p12 = scmp.lt.s32.totalorder %s34_s8, %s34_s8 }
  0x1a   :  { %p784_p11 = scmp.ne.s32.totalorder %s34_s8, %s783_s16  ;;  %p789_p13 = scmp.lt.s32.totalorder %s783_s16, %s783_s16 }
  0x1c   :  { %p790_p0 = por %p789_p13, %p788_p12 }
  0x1e   :  { %p791_p1 = pnand %p790_p0, %p784_p11 }
  0x20   :  { %794 = shalt.err (!%p791_p1)
}
  0x21   :  { %s803_s1 = smov 64   ;;  %s804_s17 = smov 4  }
  0x22   :  { %39 = dma.hbm_to_vmem [thread:$0]  %s875_s3, 4096, %s34_s8, [#allocation5], %s803_s1, %s803_s1, %s804_s17  }
  0x23   :  { %795 = dma.done.wait [#allocation3], 1024  }
  0x24   :  { %796 = vsyncadd [#allocation3], 4294966272 }
  0x25   :  { %797 = dma.done.wait [#allocation5], 4096  }
  0x26   :  { %798 = vsyncadd [#allocation5], 4294963200  ;;  %v805_v0 = vmov 0   ;;  %v691_v1 = vld [vmem:[#allocation2 + $0x4] ss:$16 sps:$4 sm:$0xff]   ;;  %vm120_vm0 = vcmask 261120   ;;  %v60_v42 = vlaneseq }
  0x27   :  { %156 = vmatprep.mubr.bf16.mxu0 %v805_v0  ;;  %197 = vmatprep.mubr.bf16.mxu1 %v805_v0  ;;  %v693_v2 = vld [vmem:[#allocation2 + $0xc] ss:$16 sps:$4 sm:$0xff]   ;;  %v695_v3 = vld [vmem:[#allocation2] ss:$16 sps:$4 sm:$0xff]   ;;  %v696_v4 = vld [vmem:[#allocation2 + $0x8] ss:$16 sps:$4 sm:$0xff]  }
  0x28   :  { %124 = vmatprep.subr.bf16.mxu0 %v691_v1  ;;  %165 = vmatprep.subr.bf16.mxu1 %v693_v2  ;;  %v697_v5 = vld [vmem:[#allocation2 + $0x24] ss:$16 sps:$4 sm:$0xff]   ;;  %v699_v6 = vld [vmem:[#allocation2 + $0x2c] ss:$16 sps:$4 sm:$0xff]   ;;  %v701_v7 = vld [vmem:[#allocation2 + $0x20] ss:$16 sps:$4 sm:$0xff]  }
  0x29   :  { %125 = vmatpush1.bf16.msra.mxu0 %v695_v3  ;;  %166 = vmatpush1.bf16.msra.mxu1 %v696_v4  ;;  %v702_v8 = vld [vmem:[#allocation2 + $0x28] ss:$16 sps:$4 sm:$0xff]   ;;  %v49_v9 = vld [vmem:[%s872_s0] sm:$0xf]  ;;  %v711_v18 = vld [vmem:[#allocation4 + $0x50] sm:$0xff]   ;;  %v61_v43 = vshrl.u32 %v60_v42, 7 }
  0x2a   :  { %126 = vmatprep.subr.bf16.mxu0 %v697_v5  ;;  %167 = vmatprep.subr.bf16.mxu1 %v699_v6  ;;  %v703_v10 = vld [vmem:[#allocation4 + $0x40] sm:$0xff]   ;;  %v707_v14 = vld [vmem:[#allocation4 + $0x48] sm:$0xff]   ;;  %v712_v19 = vld [vmem:[#allocation4 + $0xd0] sm:$0xff]  }
  0x2b   :  { %v704_v11 = vld [vmem:[#allocation4 + $0xc0] sm:$0xff]   ;;  %v708_v15 = vld [vmem:[#allocation4 + $0xc8] sm:$0xff]   ;;  %v713_v20 = vld [vmem:[#allocation4 + $0x10] sm:$0xff]   ;;  %v62_v44 = vsub.s32 0, %v61_v43  ;;  %v70_v45 = vsub.s32 2, %v61_v43  ;;  %v66_v47 = vsub.s32 1, %v61_v43 }
  0x2c   :  { %v705_v12 = vld [vmem:[#allocation4] sm:$0xff]   ;;  %v709_v16 = vld [vmem:[#allocation4 + $0x8] sm:$0xff]   ;;  %v714_v21 = vld [vmem:[#allocation4 + $0x90] sm:$0xff]   ;;  %v74_v48 = vsub.s32 3, %v61_v43 }
  0x2d   :  { %127 = vmatpush1.bf16.msra.mxu0 %v701_v7  ;;  %168 = vmatpush1.bf16.msra.mxu1 %v702_v8  ;;  %v706_v13 = vld [vmem:[#allocation4 + $0x80] sm:$0xff]   ;;  %v710_v17 = vld [vmem:[#allocation4 + $0x88] sm:$0xff]   ;;  %v715_v22 = vld [vmem:[#allocation4 + $0x58] sm:$0xff]  }
  0x2e   :  { %640 = vmatprep.subr.bf16.mxu0 %v703_v10  ;;  %662 = vmatprep.subr.bf16.mxu1 %v704_v11  ;;  %v716_v23 = vld [vmem:[#allocation4 + $0xd8] sm:$0xff]   ;;  %v719_v26 = vld [vmem:[#allocation4 + $0x60] sm:$0xff]   ;;  %v723_v30 = vld [vmem:[#allocation4 + $0x68] sm:$0xff]  }
  0x2f   :  { %v717_v24 = vld [vmem:[#allocation4 + $0x18] sm:$0xff]   ;;  %v720_v27 = vld [vmem:[#allocation4 + $0xe0] sm:$0xff]   ;;  %v724_v31 = vld [vmem:[#allocation4 + $0xe8] sm:$0xff]  }
  0x30   :  { %605 = vmatmul.mubr.msk.bf16.vlgmr.msra.gmra.mrb[0].mxu0 %vm120_vm0, %v49_v9  ;;  %606 = vmatmul.mubr.msk.bf16.vlgmr.msra.gmra.mrb[0].mxu1 %vm120_vm0, %v49_v9  ;;  %v718_v25 = vld [vmem:[#allocation4 + $0x98] sm:$0xff]   ;;  %v721_v28 = vld [vmem:[#allocation4 + $0x20] sm:$0xff]   ;;  %v725_v32 = vld [vmem:[#allocation4 + $0x28] sm:$0xff]  }
  0x31   :  { %641 = vmatpush3.bf16.msra.mxu0 %v705_v12  ;;  %663 = vmatpush3.bf16.msra.mxu1 %v706_v13  ;;  %v722_v29 = vld [vmem:[#allocation4 + $0xa0] sm:$0xff]   ;;  %v726_v33 = vld [vmem:[#allocation4 + $0xa8] sm:$0xff]   ;;  %v727_v34 = vld [vmem:[#allocation4 + $0x70] sm:$0xff]  }
  0x32   :  { %642 = vmatprep.subr.bf16.mxu0 %v707_v14  ;;  %664 = vmatprep.subr.bf16.mxu1 %v708_v15  ;;  %v728_v35 = vld [vmem:[#allocation4 + $0xf0] sm:$0xff]   ;;  %v731_v38 = vld [vmem:[#allocation4 + $0x78] sm:$0xff]   ;;  %v58_v46 = vld [vmem:[%s874_s2] sm:$0xf] }
  0x33   :  { %v729_v36 = vld [vmem:[#allocation4 + $0x30] sm:$0xff]   ;;  %v732_v39 = vld [vmem:[#allocation4 + $0xf8] sm:$0xff]   ;;  %v63_v49 = vrot.slane %v58_v46, %v62_v44  ;;  %v71_v50 = vrot.slane %v58_v46, %v70_v45  ;;  %v67_v51 = vrot.slane %v58_v46, %v66_v47  ;;  %v75_v52 = vrot.slane %v58_v46, %v74_v48  ;;  %v607_v43 = vld [vmem:[%s876_s4] ss:$0 sm:$0xff] }
  0x34   :  { %v730_v37 = vld [vmem:[#allocation4 + $0xb0] sm:$0xff]   ;;  %v733_v40 = vld [vmem:[#allocation4 + $0x38] sm:$0xff]  }
  0x35   :  { %643 = vmatpush3.bf16.msra.mxu0 %v709_v16  ;;  %665 = vmatpush3.bf16.msra.mxu1 %v710_v17  ;;  %v734_v41 = vld [vmem:[#allocation4 + $0xb8] sm:$0xff]  }
  0x36   :  { %644 = vmatprep.subr.bf16.mxu0 %v711_v18  ;;  %666 = vmatprep.subr.bf16.mxu1 %v712_v19 }
  0x39   :  { %645 = vmatpush3.bf16.msra.mxu0 %v713_v20  ;;  %667 = vmatpush3.bf16.msra.mxu1 %v714_v21 }
  0x3a   :  { %646 = vmatprep.subr.bf16.mxu0 %v715_v22  ;;  %668 = vmatprep.subr.bf16.mxu1 %v716_v23 }
  0x3d   :  { %647 = vmatpush3.bf16.msra.mxu0 %v717_v24  ;;  %669 = vmatpush3.bf16.msra.mxu1 %v718_v25 }
  0x3e   :  { %648 = vmatprep.subr.bf16.mxu0 %v719_v26  ;;  %670 = vmatprep.subr.bf16.mxu1 %v720_v27 }
  0x41   :  { %649 = vmatpush3.bf16.msra.mxu0 %v721_v28  ;;  %671 = vmatpush3.bf16.msra.mxu1 %v722_v29 }
  0x42   :  { %650 = vmatprep.subr.bf16.mxu0 %v723_v30  ;;  %672 = vmatprep.subr.bf16.mxu1 %v724_v31 }
  0x45   :  { %651 = vmatpush3.bf16.msra.mxu0 %v725_v32  ;;  %673 = vmatpush3.bf16.msra.mxu1 %v726_v33 }
  0x46   :  { %652 = vmatprep.subr.bf16.mxu0 %v727_v34  ;;  %674 = vmatprep.subr.bf16.mxu1 %v728_v35 }
  0x49   :  { %653 = vmatpush3.bf16.msra.mxu0 %v729_v36  ;;  %675 = vmatpush3.bf16.msra.mxu1 %v730_v37 }
  0x4a   :  { %654 = vmatprep.subr.bf16.mxu0 %v731_v38  ;;  %676 = vmatprep.subr.bf16.mxu1 %v732_v39 }
  0x4d   :  { %655 = vmatpush3.bf16.msra.mxu0 %v733_v40  ;;  %677 = vmatpush3.bf16.msra.mxu1 %v734_v41 }
 0x103   :  { %v158_v53 = vpop.f32.mrb[0].mxu0  ;;  %v199_v54 = vpop.f32.mrb[0].mxu1 }
 0x104   :  { %v159_v55 = vadd.f32 %v158_v53, %v63_v49  ;;  %v200_v56 = vadd.f32 %v199_v54, %v71_v50  ;;  %v160_v57 = vpop.f32.mrb[1].mxu0  ;;  %v201_v58 = vpop.f32.mrb[1].mxu1 }
 0x105   :  { %v161_v59 = vadd.f32 %v160_v57, %v67_v51  ;;  %v202_v60 = vadd.f32 %v201_v58, %v75_v52  ;;  %v162_v61 = vpop.f32.mrb[2].mxu0  ;;  %v203_v62 = vpop.f32.mrb[2].mxu1 }
 0x106   :  { %v206_v63 = vmin.f32 %v159_v55, 20.0  ;;  %v208_v0 = vmin.f32 %v200_v56, 20.0  ;;  %v163_v1 = vpop.f32.mrb[3].mxu0  ;;  %v204_v2 = vpop.f32.mrb[3].mxu1 }
 0x107   :  { %v207_v3 = vmin.f32 %v161_v59, 20.0  ;;  %v209_v4 = vmin.f32 %v202_v60, 20.0 }
 0x108   :  { %v210_v5 = vmul.f32 1.442695, %v206_v63  ;;  %v214_v6 = vmul.f32 1.442695, %v208_v0 }
 0x109   :  { %v212_v7 = vmul.f32 1.442695, %v207_v3  ;;  %v216_v8 = vmul.f32 1.442695, %v209_v4 }
 0x10a   :  { %735 = vpow2.f32 %v210_v5 }
 0x10b   :  { %737 = vpow2.f32 %v214_v6 }
 0x10c   :  { %739 = vpow2.f32 %v212_v7 }
 0x10d   :  { %741 = vpow2.f32 %v216_v8 }
 0x114   :  { %v736_v9 = vpop.eup %735 }
 0x115   :  { %v738_v10 = vpop.eup %737  ;;  %v218_v11 = vadd.f32 2.0, %v736_v9 }
 0x116   :  { %v740_v12 = vpop.eup %739  ;;  %v220_v13 = vadd.f32 2.0, %v738_v10 }
 0x117   :  { %v742_v14 = vpop.eup %741  ;;  %v222_v15 = vmul.f32 %v736_v9, %v218_v11  ;;  %v219_v16 = vadd.f32 2.0, %v740_v12 }
 0x118   :  { %v224_v17 = vmul.f32 %v738_v10, %v220_v13  ;;  %v221_v18 = vadd.f32 2.0, %v742_v14 }
 0x119   :  { %v226_v19 = vadd.f32 2.0, %v222_v15  ;;  %v223_v20 = vmul.f32 %v740_v12, %v219_v16  ;;  %v234_v26 = vmul.f32 %v222_v15, %v159_v55 }
 0x11a   :  { %v228_v21 = vadd.f32 2.0, %v224_v17  ;;  %v225_v22 = vmul.f32 %v742_v14, %v221_v18  ;;  %v236_v28 = vmul.f32 %v224_v17, %v200_v56 }
 0x11b   :  { %743 = vrcp.f32 %v226_v19  ;;  %v227_v23 = vadd.f32 2.0, %v223_v20  ;;  %v235_v29 = vmul.f32 %v223_v20, %v161_v59 }
 0x11c   :  { %745 = vrcp.f32 %v228_v21  ;;  %v229_v24 = vadd.f32 2.0, %v225_v22  ;;  %v237_v32 = vmul.f32 %v225_v22, %v202_v60 }
 0x11d   :  { %747 = vrcp.f32 %v227_v23 }
 0x11e   :  { %749 = vrcp.f32 %v229_v24 }
 0x125   :  { %v744_v25 = vpop.eup %743 }
 0x126   :  { %v746_v27 = vpop.eup %745  ;;  %v238_v31 = vmul.f32 %v744_v25, %v234_v26 }
 0x127   :  { %v748_v30 = vpop.eup %747  ;;  %v240_v34 = vmul.f32 %v746_v27, %v236_v28 }
 0x128   :  { %v750_v33 = vpop.eup %749  ;;  %v239_v35 = vmul.f32 %v748_v30, %v235_v29  ;;  %v242_v38 = vpack.c.bf16 %v238_v31, %v238_v31 }
 0x129   :  { %v241_v36 = vmul.f32 %v750_v33, %v237_v32  ;;  %v244_v40 = vpack.c.bf16 %v240_v34, %v240_v34 }
 0x12a   :  { %v243_v37 = vpack.c.bf16 %v239_v35, %v239_v35 }
 0x12b   :  { %v245_v39 = vpack.c.bf16 %v241_v36, %v241_v36 }
 0x12c   :  { %541 = vmatprep.mubr.bf16.mxu0 %v243_v37 }
 0x12d   :  { %581 = vmatprep.mubr.bf16.mxu1 %v245_v39  ;;  %542 = vmatmul.mubr.bf16.vlgmr.msra.gmra.mrb[4].mxu0 %v242_v38 }
 0x12e   :  { %582 = vmatmul.mubr.bf16.vlgmr.msra.gmra.mrb[4].mxu1 %v244_v40 }
 0x200   :  { %v656_v41 = vpop.f32.mrb[4].mxu0 }
 0x201   :  { %v678_v42 = vpop.f32.mrb[4].mxu1  ;;  %v657_v44 = vpop.f32.mrb[5].mxu0 }
 0x202   :  { %v658_v45 = vadd.f32 %v657_v44, %v656_v41  ;;  %v679_v46 = vpop.f32.mrb[5].mxu1  ;;  %v659_v47 = vpop.f32.mrb[6].mxu0 }
 0x203   :  { %v680_v48 = vadd.f32 %v679_v46, %v678_v42  ;;  %v681_v49 = vpop.f32.mrb[6].mxu1  ;;  %v660_v50 = vpop.f32.mrb[7].mxu0 }
 0x204   :  { %v544_v51 = vadd.f32 %v658_v45, %v607_v43  ;;  %v682_v52 = vpop.f32.mrb[7].mxu1 }
 0x206   :  { %v584_v53 = vadd.f32 %v680_v48, %v544_v51 }
 0x208   :  { %v589_v54 = vpack.c.bf16 %v584_v53, %v584_v53 }
 0x20a   :  { %590 = vst [vmem:[%s877_s5] sm:$0xf] %v589_v54 }
 0x20b   :  { %595 = vsyncpa [#allocation3], 1 }
 0x20c   :  { %596 = vsyncpa [#allocation5], 1 }

</bundles_post_ra>
